<compile_context>
chip_gen: v7x
topology: tpu7x:2x2x1
jax: 0.10.0
libtpu: 0.0.40
codegen_flags: <defaults>
</compile_context>

<pallas_src>
import functools

import jax
import jax.numpy as jnp
from jax.experimental import pallas as pl
from jax.experimental.pallas import tpu as pltpu

_EPS = 1e-5  # InstanceNorm3d default eps

try:  # set the scoped VMEM budget explicitly (v7x: 64 MiB, v5e/v6e: 128 MiB)
    _VMEM_LIMIT = int(pltpu.get_tpu_info().vmem_capacity_bytes * 3 // 4)
except Exception:  # older jax / query unavailable -> use compiler default
    _VMEM_LIMIT = None


def _cparams(*semantics):
    return pltpu.CompilerParams(dimension_semantics=semantics,
                                vmem_limit_bytes=_VMEM_LIMIT)


def _pick_tile(n, target):
    """Largest divisor of n that is <= target."""
    t = max(1, min(n, target))
    while n % t:
        t -= 1
    return t


# --------------------------- ConvTranspose3d (k=2, s=2) ---------------------------
def upconv2x2x2(x, w_up, b_up, *, d_tile=4):
    """x: (N, D, H, W, Cin) f32 channels-last; w_up: (Cin, Cout, 2, 2, 2);
    b_up: (Cout,).  Returns (N, 2D, 2H, 2W, Cout) bf16."""
    N, D, H, W, Cin = x.shape
    Cout = w_up.shape[1]
    C2 = 2 * Cout
    dT = _pick_tile(D, d_tile)
    nT = D // dT
    M = dT * H * W

    # (ci, co, i, j, k) -> (i, j, ci, k*Cout + co)
    wp = jnp.transpose(w_up, (2, 3, 0, 4, 1)).reshape(2, 2, Cin, C2)
    wp = wp.astype(jnp.bfloat16)
    bp = jnp.tile(b_up.astype(jnp.float32), (2,)).reshape(1, C2)
    xf = x.reshape(N * D, H, W, Cin)

    def kernel(x_ref, w_ref, b_ref, o_ref):
        xb = x_ref[...].astype(jnp.bfloat16).reshape(M, Cin)
        r = jnp.dot(xb, w_ref[...], preferred_element_type=jnp.float32)
        r = r + b_ref[...]
        o_ref[...] = r.reshape(dT, H, W, C2).astype(o_ref.dtype)

    out = pl.pallas_call(
        kernel,
        out_shape=jax.ShapeDtypeStruct((N * D, 2, H, 2, W, C2), jnp.bfloat16),
        grid=(N * nT, 2, 2),
        in_specs=[
            pl.BlockSpec((dT, H, W, Cin), lambda t, i, j: (t, 0, 0, 0)),
            pl.BlockSpec((None, None, Cin, C2), lambda t, i, j: (i, j, 0, 0)),
            pl.BlockSpec((1, C2), lambda t, i, j: (0, 0)),
        ],
        out_specs=pl.BlockSpec((dT, None, H, None, W, C2),
                               lambda t, i, j: (t, i, 0, j, 0, 0)),
        compiler_params=_cparams("parallel", "arbitrary", "arbitrary"),
    )(xf, wp, bp)
    # (N*D, 2, H, 2, W, 2*Cout) in row-major order is exactly (N, 2D, 2H, 2W, Cout).
    return out.reshape(N, 2 * D, 2 * H, 2 * W, Cout)


# ----------------- 3x3x3 conv + streamed InstanceNorm statistics -----------------
def _make_conv_kernel(num_src, cins, Cout, dT, H, W, norm_in, m_in):
    Ctot = sum(cins)
    M = dT * H * W

    def kernel(*refs):
        pos = 0
        srcs = []
        for _ in range(num_src):
            srcs.append(refs[pos:pos + 3])
            pos += 3
        in_stats_ref = None
        if norm_in:
            in_stats_ref = refs[pos]
            pos += 1
        w_ref = refs[pos]; pos += 1
        y_ref = refs[pos]; pos += 1
        stats_ref = refs[pos]; pos += 1
        xpad_ref = refs[pos]; pos += 1

        t = pl.program_id(1)
        n_t = pl.num_programs(1)

        # Keep the zero H/W halo of the padded VMEM tile valid (cheap; every step).
        zrow = jnp.zeros((dT + 2, 1, W + 2, Ctot), jnp.bfloat16)
        zcol = jnp.zeros((dT + 2, H + 2, 1, Ctot), jnp.bfloat16)
        xpad_ref[:, 0:1, :, :] = zrow
        xpad_ref[:, H + 1:H + 2, :, :] = zrow
        xpad_ref[:, :, 0:1, :] = zcol
        xpad_ref[:, :, W + 1:W + 2, :] = zcol

        if norm_in:
            st = in_stats_ref[...]                           # (2, Cin) f32
            mean = st[0:1, :] * (1.0 / m_in)
            var = st[1:2, :] * (1.0 / m_in) - mean * mean
            inv = jax.lax.rsqrt(var + _EPS)

        c0 = 0
        for (body_ref, hup_ref, hlo_ref), cs in zip(srcs, cins):
            body = body_ref[...]
            hup = hup_ref[...]
            hlo = hlo_ref[...]
            if norm_in:  # fused InstanceNorm + ReLU of the previous block
                body = jnp.maximum((body.astype(jnp.float32) - mean) * inv, 0.0)
                hup = jnp.maximum((hup.astype(jnp.float32) - mean) * inv, 0.0)
                hlo = jnp.maximum((hlo.astype(jnp.float32) - mean) * inv, 0.0)
            body = body.astype(jnp.bfloat16)
            hup = jnp.where(t > 0, hup, 0).astype(jnp.bfloat16)
            hlo = jnp.where(t < n_t - 1, hlo, 0).astype(jnp.bfloat16)
            xpad_ref[0:1, 1:H + 1, 1:W + 1, c0:c0 + cs] = hup
            xpad_ref[1:dT + 1, 1:H + 1, 1:W + 1, c0:c0 + cs] = body
            xpad_ref[dT + 1:dT + 2, 1:H + 1, 1:W + 1, c0:c0 + cs] = hlo
            c0 += cs

        # im2col: one lane-dense (M, 27*Ctot) LHS -> single MXU matmul (K = 27*Ctot).
        xpad = xpad_ref[...]
        parts = []
        for kd in range(3):
            for kh in range(3):
                for kw in range(3):
                    parts.append(
                        xpad[kd:kd + dT, kh:kh + H, kw:kw + W, :].reshape(M, Ctot))
        lhs = jnp.concatenate(parts, axis=-1)
        acc = jnp.dot(lhs, w_ref[...], preferred_element_type=jnp.float32)

        y_ref[...] = acc.reshape(dT, H, W, Cout)

        @pl.when(t == 0)
        def _init():
            stats_ref[...] = jnp.zeros_like(stats_ref)

        ssum = jnp.sum(acc, axis=0, keepdims=True)
        ssq = jnp.sum(acc * acc, axis=0, keepdims=True)
        stats_ref[...] = stats_ref[...] + jnp.concatenate([ssum, ssq], axis=0)

    return kernel


def _conv_in_stats(sources, w_packed, *, d_tile=8, in_stats=None, m_in=None):
    """3x3x3 conv (pad=1) over channel-concatenated `sources`, depth-tiled.

    If `in_stats` is given, the (single) source is normalized+ReLU'd with those
    statistics inside the kernel (fusing the previous block's InstanceNorm+ReLU).
    Returns (y, stats): y = pre-norm conv output (f32), stats = per-(n, channel)
    [sum, sum of squares] over all spatial positions.
    """
    N, D, H, W = sources[0].shape[:4]
    cins = tuple(int(s.shape[-1]) for s in sources)
    Ctot = sum(cins)
    Cout = int(w_packed.shape[-1])
    assert w_packed.shape[0] == 27 * Ctot
    dT = _pick_tile(D, d_tile)
    nT = D // dT

    kernel = _make_conv_kernel(len(sources), cins, Cout, dT, H, W,
                               norm_in=in_stats is not None,
                               m_in=float(m_in) if m_in is not None else None)

    in_specs, args = [], []
    for s in sources:
        cs = int(s.shape[-1])
        in_specs += [
            # body tile
            pl.BlockSpec((None, dT, H, W, cs), lambda n, t: (n, t, 0, 0, 0)),
            # one-row depth halos (index clamped at the boundary; masked in-kernel)
            pl.BlockSpec((None, 1, H, W, cs),
                         lambda n, t: (n, jnp.maximum(t * dT - 1, 0), 0, 0, 0)),
            pl.BlockSpec((None, 1, H, W, cs),
                         lambda n, t: (n, jnp.minimum((t + 1) * dT, D - 1), 0, 0, 0)),
        ]
        args += [s, s, s]
    if in_stats is not None:
        in_specs.append(pl.BlockSpec((None, 2, cins[0]), lambda n, t: (n, 0, 0)))
        args.append(in_stats)
    in_specs.append(pl.BlockSpec((27 * Ctot, Cout), lambda n, t: (0, 0)))
    args.append(w_packed)

    y, stats = pl.pallas_call(
        kernel,
        out_shape=(jax.ShapeDtypeStruct((N, D, H, W, Cout), jnp.float32),
                   jax.ShapeDtypeStruct((N, 2, Cout), jnp.float32)),
        grid=(N, nT),
        in_specs=in_specs,
        out_specs=(
            pl.BlockSpec((None, dT, H, W, Cout), lambda n, t: (n, t, 0, 0, 0)),
            pl.BlockSpec((None, 2, Cout), lambda n, t: (n, 0, 0)),
        ),
        scratch_shapes=[pltpu.VMEM((dT + 2, H + 2, W + 2, Ctot), jnp.bfloat16)],
        compiler_params=_cparams("parallel", "arbitrary"),
    )(*args)
    return y, stats


# ------------------------- final InstanceNorm + ReLU pass -------------------------
def _norm_relu_kernel(y_ref, stats_ref, o_ref, *, m_total):
    st = stats_ref[...]
    mean = st[0:1, :] * (1.0 / m_total)
    var = st[1:2, :] * (1.0 / m_total) - mean * mean
    inv = jax.lax.rsqrt(var + _EPS)
    o_ref[...] = jnp.maximum((y_ref[...] - mean) * inv, 0.0).astype(o_ref.dtype)


def _norm_relu(y, stats, *, d_tile=8):
    N, D, H, W, C = y.shape
    dT = _pick_tile(D, d_tile)
    nT = D // dT
    kernel = functools.partial(_norm_relu_kernel, m_total=float(D * H * W))
    return pl.pallas_call(
        kernel,
        out_shape=jax.ShapeDtypeStruct((N, D, H, W, C), jnp.float32),
        grid=(N, nT),
        in_specs=[
            pl.BlockSpec((None, dT, H, W, C), lambda n, t: (n, t, 0, 0, 0)),
            pl.BlockSpec((None, 2, C), lambda n, t: (n, 0, 0)),
        ],
        out_specs=pl.BlockSpec((None, dT, H, W, C), lambda n, t: (n, t, 0, 0, 0)),
        compiler_params=_cparams("parallel", "parallel"),
    )(y, stats)


# ------------------------------ parameter packing ------------------------------
def _pack_conv3_weight(w):
    """PyTorch Conv3d weight (Cout, Cin, 3, 3, 3) -> dense (27*Cin, Cout) bf16 slab
    whose K order (kd, kh, kw, cin) matches the in-kernel im2col."""
    cout, cin = w.shape[0], w.shape[1]
    return jnp.transpose(w, (2, 3, 4, 1, 0)).reshape(27 * cin, cout).astype(jnp.bfloat16)


def init_upconv_params(key, in_channels, out_channels):
    """Deterministic synthetic params with the same shapes as the PyTorch module."""
    ks = jax.random.split(key, 6)

    def u(k, shape, fan_in):
        s = 1.0 / float(fan_in) ** 0.5
        return jax.random.uniform(k, shape, jnp.float32, -s, s)

    return {
        "w_up": u(ks[0], (in_channels, out_channels, 2, 2, 2), in_channels * 8),
        "b_up": u(ks[1], (out_channels,), in_channels * 8),
        "w1": u(ks[2], (out_channels, 2 * out_channels, 3, 3, 3), 2 * out_channels * 27),
        "b1": u(ks[3], (out_channels,), 2 * out_channels * 27),
        "w2": u(ks[4], (out_channels, out_channels, 3, 3, 3), out_channels * 27),
        "b2": u(ks[5], (out_channels,), out_channels * 27),
    }


# ----------------------------------- forward -----------------------------------
def up_conv_forward(from_down, from_up, params, *, d_tile=8):
    """UpConv.forward.  from_down: (N, Cout, 2D, 2H, 2W), from_up: (N, Cin, D, H, W),
    both NCDHW f32.  Returns (N, Cout, 2D, 2H, 2W) f32."""
    n, cin, d, h, w = from_up.shape
    cout = params["w_up"].shape[1]
    d2, h2, w2 = 2 * d, 2 * h, 2 * w
    assert from_down.shape == (n, cout, d2, h2, w2), from_down.shape

    # NCDHW -> NDHWC (channels on lanes)
    fu = jnp.transpose(from_up, (0, 2, 3, 4, 1)).astype(jnp.float32)
    fd = jnp.transpose(from_down, (0, 2, 3, 4, 1)).astype(jnp.float32)

    # ConvTranspose3d(k=2, s=2) -> bf16 activation
    up = upconv2x2x2(fu, params["w_up"], params["b_up"])

    # block1: conv over cat([up, from_down], channels) (concat fused in-kernel).
    # Conv bias is dropped: it is exactly cancelled by InstanceNorm(affine=False).
    w1p = _pack_conv3_weight(params["w1"])
    y1, stats1 = _conv_in_stats([up, fd], w1p, d_tile=d_tile)

    # block2: block1's InstanceNorm+ReLU is fused into this kernel's input path.
    w2p = _pack_conv3_weight(params["w2"])
    m_spatial = d2 * h2 * w2
    y2, stats2 = _conv_in_stats([y1], w2p, d_tile=d_tile,
                                in_stats=stats1, m_in=m_spatial)

    # final InstanceNorm + ReLU
    out = _norm_relu(y2, stats2, d_tile=d_tile)
    return jnp.transpose(out, (0, 4, 1, 2, 3))  # NDHWC -> NCDHW


# ----------------------- pure-JAX reference (for checking) -----------------------
def _ref_upconv(x, w, b):
    nb, db, hb, wb2, _ = x.shape
    co = w.shape[1]
    xb = x.astype(jnp.bfloat16).astype(jnp.float32)
    wb = w.astype(jnp.bfloat16).astype(jnp.float32)
    y = jnp.einsum("ndhwc,coijk->ndihjwko", xb, wb)
    y = y + b.reshape((1,) * 7 + (-1,))
    y = y.reshape(nb, 2 * db, 2 * hb, 2 * wb2, co)
    return y.astype(jnp.bfloat16).astype(jnp.float32)  # kernel stores `up` as bf16


def _ref_conv_block(x, w, b):
    xb = x.astype(jnp.bfloat16).astype(jnp.float32)
    wb = jnp.transpose(w, (2, 3, 4, 1, 0)).astype(jnp.bfloat16).astype(jnp.float32)
    y = jax.lax.conv_general_dilated(
        xb, wb, window_strides=(1, 1, 1),
        padding=((1, 1), (1, 1), (1, 1)),
        dimension_numbers=("NDHWC", "DHWIO", "NDHWC"))
    y = y + b.reshape(1, 1, 1, 1, -1)
    mean = jnp.mean(y, axis=(1, 2, 3), keepdims=True)
    var = jnp.mean((y - mean) ** 2, axis=(1, 2, 3), keepdims=True)
    return jnp.maximum((y - mean) * jax.lax.rsqrt(var + _EPS), 0.0)


def _ref_up_conv(from_down, from_up, params):
    fu = jnp.transpose(from_up, (0, 2, 3, 4, 1)).astype(jnp.float32)
    fd = jnp.transpose(from_down, (0, 2, 3, 4, 1)).astype(jnp.float32)
    up = _ref_upconv(fu, params["w_up"], params["b_up"])
    x = jnp.concatenate([up, fd], axis=-1)
    x = _ref_conv_block(x, params["w1"], params["b1"])
    x = _ref_conv_block(x, params["w2"], params["b2"])
    return jnp.transpose(x, (0, 4, 1, 2, 3))


if __name__ == "__main__":
    key = jax.random.PRNGKey(0)
    kx1, kx2, kp = jax.random.split(key, 3)

    # from_up: (2, 16, 8, 8, 8);  from_down: (2, 8, 16, 16, 16)
    N, CIN, COUT, S = 2, 16, 8, 8
    from_up = jax.random.normal(kx1, (N, CIN, S, S, S), jnp.float32)
    from_down = jax.random.normal(kx2, (N, COUT, 2 * S, 2 * S, 2 * S), jnp.float32)
    params = init_upconv_params(kp, CIN, COUT)

    out = up_conv_forward(from_down, from_up, params)
    out = jax.block_until_ready(out)
    assert out.shape == (N, COUT, 2 * S, 2 * S, 2 * S), out.shape

    ref = _ref_up_conv(from_down, from_up, params)
    ref = jax.block_until_ready(ref)
    max_err = float(jnp.max(jnp.abs(out - ref)))
    assert jnp.allclose(out, ref, atol=5e-3, rtol=5e-3), max_err

    print("KERNEL_OK")
</pallas_src>

<mosaic_0001>
module attributes {stable_mosaic.version = 11 : i64} {
  func.func @kernel(%arg0: i32, %arg1: i32, %arg2: i32, %arg3: memref<4x8x8x16xf32, #tpu.memory_space<vmem>>, %arg4: memref<1x1x16x16xbf16, #tpu.memory_space<vmem>>, %arg5: memref<1x16xf32, #tpu.memory_space<vmem>>, %arg6: memref<4x1x8x1x8x16xbf16, #tpu.memory_space<vmem>>) attributes {dimension_semantics = [#tpu.dimension_semantics<parallel>, #tpu.dimension_semantics<arbitrary>, #tpu.dimension_semantics<arbitrary>], iteration_bounds = array<i64: 4, 2, 2>, scalar_prefetch = 0 : i64, scratch_operands = 0 : i64, tpu.core_type = #tpu.core_type<tc>, window_params = [{transform_indices = @transform_0, window_bounds = array<i64: 4, 8, 8, 16>}, {transform_indices = @transform_1, window_bounds = array<i64: 1, 1, 16, 16>}, {pipeline_mode = #tpu.pipeline_mode<synchronous>, transform_indices = @transform_2, window_bounds = array<i64: 1, 16>}, {transform_indices = @transform_3, window_bounds = array<i64: 4, 1, 8, 1, 8, 16>}]} {
    %c0 = arith.constant 0 : index
    %c0_0 = arith.constant 0 : index
    %c0_1 = arith.constant 0 : index
    %c0_2 = arith.constant 0 : index
    %0 = vector.load %arg3[%c0, %c0_0, %c0_1, %c0_2] : memref<4x8x8x16xf32, #tpu.memory_space<vmem>>, vector<4x8x8x16xf32>
    %1 = arith.truncf %0 : vector<4x8x8x16xf32> to vector<4x8x8x16xbf16>
    %2 = vector.shape_cast %1 : vector<4x8x8x16xbf16> to vector<256x16xbf16>
    %c0_3 = arith.constant 0 : index
    %c0_4 = arith.constant 0 : index
    %c0_5 = arith.constant 0 : index
    %c0_6 = arith.constant 0 : index
    %3 = vector.load %arg4[%c0_3, %c0_4, %c0_5, %c0_6] : memref<1x1x16x16xbf16, #tpu.memory_space<vmem>>, vector<1x1x16x16xbf16>
    %4 = vector.shape_cast %3 : vector<1x1x16x16xbf16> to vector<16x16xbf16>
    %cst = arith.constant dense<0.000000e+00> : vector<256x16xf32>
    %5 = tpu.matmul %2, %4, %cst {dimension_numbers = #tpu.dot_dimension_numbers<[1], [0], [0], [1], [0, 0, 1, 1], [], []>} : vector<256x16xbf16>, vector<16x16xbf16>, vector<256x16xf32> -> vector<256x16xf32>
    %c0_7 = arith.constant 0 : index
    %c0_8 = arith.constant 0 : index
    %6 = vector.load %arg5[%c0_7, %c0_8] : memref<1x16xf32, #tpu.memory_space<vmem>>, vector<1x16xf32>
    %7 = vector.broadcast %6 : vector<1x16xf32> to vector<256x16xf32>
    %8 = arith.addf %5, %7 : vector<256x16xf32>
    %9 = vector.shape_cast %8 : vector<256x16xf32> to vector<4x8x8x16xf32>
    %10 = arith.truncf %9 : vector<4x8x8x16xf32> to vector<4x8x8x16xbf16>
    %c0_9 = arith.constant 0 : index
    %c0_10 = arith.constant 0 : index
    %c0_11 = arith.constant 0 : index
    %c0_12 = arith.constant 0 : index
    %c0_13 = arith.constant 0 : index
    %c0_14 = arith.constant 0 : index
    %11 = vector.load %arg6[%c0_9, %c0_10, %c0_11, %c0_12, %c0_13, %c0_14] : memref<4x1x8x1x8x16xbf16, #tpu.memory_space<vmem>>, vector<4x1x8x1x8x16xbf16>
    %12 = vector.shape_cast %11 : vector<4x1x8x1x8x16xbf16> to vector<4x8x8x16xbf16>
    %13 = vector.shape_cast %10 : vector<4x8x8x16xbf16> to vector<4x1x8x1x8x16xbf16>
    tpu.vector_store %arg6[%c0_9, %c0_10, %c0_11, %c0_12, %c0_13, %c0_14], %13 {strides = array<i32>} : memref<4x1x8x1x8x16xbf16, #tpu.memory_space<vmem>>, vector<4x1x8x1x8x16xbf16>,
    return
  }
  func.func @transform_0(%arg0: i32, %arg1: i32, %arg2: i32) -> (i32, i32, i32, i32) {
    %c0_i32 = arith.constant 0 : i32
    %c0_i32_0 = arith.constant 0 : i32
    %c0_i32_1 = arith.constant 0 : i32
    %c0_i32_2 = arith.constant 0 : i32
    return %arg0, %c0_i32, %c0_i32_0, %c0_i32_1 : i32, i32, i32, i32
  }
  func.func @transform_1(%arg0: i32, %arg1: i32, %arg2: i32) -> (i32, i32, i32, i32) {
    %c0_i32 = arith.constant 0 : i32
    %c0_i32_0 = arith.constant 0 : i32
    %c0_i32_1 = arith.constant 0 : i32
    return %arg1, %arg2, %c0_i32, %c0_i32_0 : i32, i32, i32, i32
  }
  func.func @transform_2(%arg0: i32, %arg1: i32, %arg2: i32) -> (i32, i32) {
    %c0_i32 = arith.constant 0 : i32
    %c0_i32_0 = arith.constant 0 : i32
    %c0_i32_1 = arith.constant 0 : i32
    return %c0_i32, %c0_i32_0 : i32, i32
  }
  func.func @transform_3(%arg0: i32, %arg1: i32, %arg2: i32) -> (i32, i32, i32, i32, i32, i32) {
    %c0_i32 = arith.constant 0 : i32
    %c0_i32_0 = arith.constant 0 : i32
    %c0_i32_1 = arith.constant 0 : i32
    %c0_i32_2 = arith.constant 0 : i32
    return %arg0, %arg1, %c0_i32, %arg2, %c0_i32_0, %c0_i32_1 : i32, i32, i32, i32, i32, i32
  }
}

</mosaic_0001>

<bundles_post_ra>
// kernel: tpu_custom_call.1
= control target key start
LH: loop header
LB: loop body
LE: loop exit
PB: predicated region body
PF: predicated region fallthrough
CT: control target
= control target key end

     0   :  { %s1898_s0 = inlined_call_operand.hbm [shape: f32[16,8,8,16], index: 0, kind: input, shape index: {}]   ;;  %s1899_s1 = inlined_call_operand.hbm [shape: bf16[2,2,16,16], index: 1, kind: input, shape index: {}]   ;;  %s1900_s2 = inlined_call_operand.vmem [shape: f32[1,16], index: 2, kind: input, shape index: {}]   ;;  %s1901_s3 = inlined_call_operand.hbm [shape: bf16[16,2,8,2,8,16], index: 3, kind: output, shape index: {}]  }
   0x1   :  { %1914 = sst [smem:[#allocation23_spill]] %s1898_s0 }
   0x2   :  { %1915 = sst [smem:[#allocation24_spill]] %s1900_s2 }
   0x3   :  { %1916 = sst [smem:[#allocation25_spill]] %s1901_s3 }
   0x4   :  { %8 = vsyncpa [#allocation3], 0 }
   0x5   :  { %10 = vsyncpa [#allocation3 + $0x1], 0 }
   0x6   :  { %11 = vsyncpa [#allocation6], 0 }
   0x7   :  { %13 = vsyncpa [#allocation6 + $0x1], 0 }
   0x8   :  { %14 = vsyncpa [#allocation4], 0 }
   0x9   :  { %16 = vsyncpa [#allocation4 + $0x1], 0  ;;  %s1390_s12 = smov 0   ;;  %s1392_s13 = smov 0  }
   0xa   :  { %s1394_s14 = smov 0   ;;  %s1396_s15 = smov 0  }
   0xb   :  { %s1398_s16 = smov 0   ;;  %s1400_s17 = smov 0  }
   0xc   :  { %s1402_s18 = smov 0   ;;  %s1404_s19 = smov 0  }
   0xd   :  { %s1406_s20 = smov 0   ;;  %s1408_s21 = smov 0  }
   0xe   :  { %s1410_s22 = smov 0   ;;  %s1412_s23 = smov 0  }
   0xf   :  { %s1414_s24 = smov 0   ;;  %s1416_s25 = smov 0  }
  0x10   :  { %s1418_s26 = smov 0   ;;  %s1420_s27 = smov 0  }
  0x11 LB: > { %1917 = sst [smem:[#allocation13_spill]] %s1294_s12  ;;  %s861_s28 = sadd.s32 4294967295, %s1354_s27   ;;  %s1354_s27 = sphi %s1420_s27, %s22_s27   ;;  %s1350_s26 = sphi %s1418_s26, %s1959_s26   ;;  %s1346_s25 = sphi %s1416_s25, %s1973_s25   ;;  %s1342_s24 = sphi %s1414_s24, %s1972_s24   ;;  %s1338_s23 = sphi %s1412_s23, %s1956_s23   ;;  %s1334_s22 = sphi %s1410_s22, %s1971_s22   ;;  %s1330_s21 = sphi %s1408_s21, %s1970_s21   ;;  %s1326_s20 = sphi %s1406_s20, %s1969_s20   ;;  %s1322_s19 = sphi %s1404_s19, %s1968_s19   ;;  %s1318_s18 = sphi %s1402_s18, %s1967_s18   ;;  %s1314_s17 = sphi %s1400_s17, %s1966_s17   ;;  %s1310_s16 = sphi %s1398_s16, %s1965_s16   ;;  %s1306_s15 = sphi %s1396_s15, %s1964_s15   ;;  %s1302_s14 = sphi %s1394_s14, %s1963_s14   ;;  %s1298_s13 = sphi %s1392_s13, %s1962_s13   ;;  %s1294_s12 = sphi %s1390_s12, %s1960_s12  }
  0x12   : > { %1918 = sst [smem:[#allocation14_spill]] %s1330_s21  ;;  %p55_p0 = scmp.ne.s32.totalorder %s1326_s20, %s1322_s19 }
  0x13   : > { %1919 = sst [smem:[#allocation15_spill]] %s1334_s22  ;;  %p1903_p1 = scmp.eq.s32.totalorder %s1354_s27, 0 }
  0x14   : > { %1920 = sst [smem:[#allocation16_spill]] %s1338_s23  ;;  %p61_p2 = scmp.ne.s32.totalorder %s1322_s19, %s1318_s18 }
  0x15   : > { %1921 = sst [smem:[#allocation17_spill]] %s1350_s26  ;;  %p1475_p3 = scmp.eq.s32.totalorder %s861_s28, 0 }
  0x16   : > { %p1479_p4 = scmp.eq.s32.totalorder %s861_s28, 15  ;;  %p57_p5 = por %p1903_p1, %p55_p0 }
  0x17   : > { %p1487_p6 = por %p1475_p3, %p61_p2  ;;  %p1902_p7 = scmp.lt.s32.totalorder %s1354_s27, 16 }
  0x18   : > { %s1923_s5 = scalar_select %p1479_p4, 1, 0 }
  0x19   : > { %s1924_s6 = scalar_select %p1487_p6, 1, 0 }
  0x1a   : > { %s167_s7 = sand.u32 1, %s1326_s20   ;;  %s919_s8 = sshll.u32 %s1350_s26, 12 }
  0x1b   : > { %s865_s9 = sshll.u32 %s167_s7, 8  ;;  %s1925_s0 = sld [smem:[#allocation23_spill]] }
  0x1c   : > { %s171_s28 = scalar_lea.vmem [#allocation2], %s865_s9  ;;  %p1501_p8 = pnand %p1902_p7, %p57_p5 }
  0x1d   : > { %s179_s30 = sshll.u32 %s171_s28, 4  ;;  %s1507_s3 = scalar_lea.sflag [#allocation3], %s167_s7  ;;  %s1505_s30 = int_to_ptr.vmem [resolvable:$true] %s179_s30 }
  0x1e   : > { %p1158_p10 = pneg %p1501_p8 }
  0x21   : > { %s1497_s18 = scalar_lea.hbm %s1925_s0, %s919_s8  ;;  %s1161_s11 = scalar_lea.hbm %s1925_s0, 16384 }
  0x22   : > { %s1156_s10 = scalar_lea.hbm %s1497_s18, 4096  ;;  %p1162_p13 = scmp.lt.u32.totalorder %s1497_s18, %s1925_s0 }
  0x23   : > { %p1157_p9 = scmp.ne.s32.totalorder %s1497_s18, %s1156_s10  ;;  %p1163_p0 = scmp.lt.u32.totalorder %s1161_s11, %s1156_s10 }
  0x24   : > { %p1165_p5 = scmp.lt.u32.totalorder %s1156_s10, %s1497_s18 }
  0x25   : > { %p1159_p11 = pnand %p1158_p10, %p1157_p9  ;;  %p1164_p2 = por %p1163_p0, %p1162_p13 }
  0x27   : > { %p1160_p12 = pneg %p1159_p11  ;;  %p1166_p7 = por %p1165_p5, %p1164_p2 }
  0x29   : > { %p1167_p1 = pnand %p1166_p7, %p1160_p12 }
  0x2b   : > { %1170 = shalt.err (!%p1167_p1)
}
  0x2c   : > { %s1171_s7 = scalar_lea.vmem %s1505_s30, 4096  ;;  %s1356_s8 = smov [#allocation2]  }
  0x2d   : > { %p1172_p9 = scmp.ne.s32.totalorder %s1505_s30, %s1171_s7  ;;  %s1176_s9 = sshll.u32 %s1356_s8, 4  ;;  %s1177_s9 = int_to_ptr.vmem [resolvable:$false] %s1176_s9 }
  0x2e   : > { %s1178_s21 = scalar_lea.vmem %s1177_s9, 8192  ;;  %p1179_p4 = scmp.lt.s32.totalorder %s1505_s30, %s1177_s9 }
  0x2f   : > { %p1174_p11 = pnand %p1172_p9, %p1158_p10  ;;  %p1180_p13 = scmp.lt.s32.totalorder %s1178_s21, %s1171_s7 }
  0x31   : > { %p1175_p6 = pneg %p1174_p11  ;;  %p1181_p0 = por %p1180_p13, %p1179_p4 }
  0x33   : > { %p1182_p2 = pnand %p1181_p0, %p1175_p6 }
  0x35   : > { %1185 = shalt.err (!%p1182_p2)
}
  0x36   : > { %s1357_s10 = smov 128   ;;  %s1358_s11 = smov 8  }
  0x37   : > { %1005 = dma.hbm_to_vmem [thread:$0]  (!%p1501_p8), %s1497_s18, 4096, %s1505_s30, %s1507_s3, %s1357_s10, %s1357_s10, %s1358_s11  }
  0x38   : > { %p873_p1 = scmp.ge.s32.totalorder %s1354_s27, 1  ;;  %p210_p4 = scmp.lt.s32.totalorder %s1354_s27, 17 }
  0x39   : > { %s862_s7 = sadd.s32 4294967294, %s1354_s27   ;;  %s34_s8 = sadd.s32 1, %s1342_s24 }
  0x3a   : > { %p1537_p6 = pnand %p873_p1, %p210_p4  ;;  %s37_s9 = sadd.s32 1, %s1346_s25 }
  0x3b   : > { %p35_p7 = scmp.ge.s32.totalorder %s34_s8, 2  ;;  %s76_s29 = sadd.s32 1, %s1314_s17 }
  0x3c   : > { %p83_p8 = scmp.ne.s32.totalorder %s1314_s17, %s1310_s16  ;;  %p89_p10 = scmp.ne.s32.totalorder %s1310_s16, %s1306_s15 }
  0x3d   : > { %s1975_s8 = smov (%p35_p7, %s34_s8), 0  ;;  %s1977_s9 = smov (!%p35_p7, %s37_s9), %s1346_s25 }
  0x3e   : > { %1928 = sst [smem:[#allocation18_spill]] %s1975_s8  ;;  %s72_s3 = ssub.s32 %s1342_s24, %s1975_s8 }
  0x3f   : > { %p1929_p12 = scmp.eq.s32.totalorder %s1354_s27, 0  ;;  %p39_p9 = scmp.ge.s32.totalorder %s1977_s9, 2 }
  0x40   : > { %p1562_p11 = por %p89_p10, %p1475_p3  ;;  %s127_s15 = sadd.s32 1, %s1302_s14 }
  0x41   : > { %p1556_p5 = por %p83_p8, %p1929_p12  ;;  %p137_p13 = scmp.ne.s32.totalorder %s1302_s14, %s1298_s13 }
  0x42   : > { %s1931_s18 = scalar_select %p1562_p11, 1, 0 }
  0x43   : > { %s1979_s9 = smov (%p39_p9, %s1977_s9), 0  ;;  %s1933_s21 = sadd.s32 1, %s1350_s26 }
  0x44   : > { %1932 = sst [smem:[#allocation19_spill]] %s1979_s9  ;;  %s1981_s21 = smov (!%p39_p9, %s1933_s21), %s1350_s26 }
  0x45   : > { %s71_s10 = ssub.s32 %s1346_s25, %s1979_s9  ;;  %p1934_p0 = scmp.ne.s32.totalorder %s1923_s5, 0 }
  0x46   : > { %p43_p3 = scmp.ge.s32.totalorder %s1981_s21, 4  ;;  %s73_s4 = sor.u32 %s72_s3, %s71_s10 }
  0x47   : > { %p1578_p2 = por %p1934_p0, %p137_p13  ;;  %p74_p1 = scmp.eq.s32.totalorder %s73_s4, 0 }
  0x48   : > { %p143_p4 = scmp.ne.s32.totalorder %s1298_s13, %s1294_s12  ;;  %s1983_s21 = smov (%p43_p3, %s1981_s21), 0 }
  0x49   : > { %s1935_s11 = scalar_select %p1578_p2, 1, 0 }
  0x4a   : > { %1937 = sst [smem:[#allocation21_spill]] %s1983_s21  ;;  %s45_s8 = ssub.s32 %s1350_s26, %s1983_s21 }
  0x4b   : > { %1936 = sst [smem:[#allocation20_spill]] %s1935_s11  ;;  %p144_p7 = scmp.eq.s32.totalorder %s862_s7, 15 }
  0x4c   : > { %s1587_s0 = scalar_select %p74_p1, %s1314_s17, %s76_s29  }
  0x4d   : > { %p46_p8 = scmp.eq.s32.totalorder %s45_s8, 0  ;;  %s122_s5 = sor.u32 %s71_s10, %s45_s8 }
  0x4e   : > { %1938 = sst [smem:[#allocation22_spill]] %s1587_s0  ;;  %s124_s9 = sor.u32 %s122_s5, %s72_s3 }
  0x4f   : > { %p1591_p10 = por %p144_p7, %p143_p4  ;;  %s1940_s23 = sadd.s32 1, %s1326_s20 }
  0x50   : > { %s1598_s4 = scalar_select %p46_p8, %s1326_s20, %s1940_s23  }
  0x51   : > { %s1939_s11 = scalar_select %p1591_p10, 1, 0 }
  0x52   : > { %p125_p12 = scmp.eq.s32.totalorder %s124_s9, 0  ;;  %s189_s12 = sand.u32 1, %s1314_s17  }
  0x53   : > { %s869_s22 = sshll.u32 %s189_s12, 3  ;;  %s870_s29 = sshll.u32 %s1342_s24, 1 }
  0x54   : > { %s1602_s2 = scalar_select %p125_p12, %s1302_s14, %s127_s15  }
  0x55   : > { %s871_s21 = sshll.u32 %s1346_s25, 2  ;;  %s193_s7 = scalar_lea.vmem [#allocation5], %s869_s22 }
  0x56   : > { %s202_s26 = sshll.u32 %s193_s7, 4  ;;  %s199_s0 = sadd.s32 %s871_s21, %s870_s29  ;;  %s1606_s26 = int_to_ptr.vmem [resolvable:$true] %s202_s26 }
  0x57   : > { %s872_s8 = sshll.u32 %s199_s0, 6  ;;  %p1941_p9 = scmp.lt.s32.totalorder %s1354_s27, 16 }
  0x58   : > { %s1619_s15 = scalar_lea.hbm %s1899_s1, %s872_s8  ;;  %s1621_s22 = scalar_lea.sflag [#allocation6], %s189_s12 }
  0x59   : > { %p1612_p13 = pnand %p1941_p9, %p1556_p5  ;;  %s1186_s0 = scalar_lea.hbm %s1619_s15, 128 }
  0x5a   : > { %p1187_p0 = scmp.ne.s32.totalorder %s1619_s15, %s1186_s0  ;;  %s1191_s10 = scalar_lea.hbm %s1899_s1, 512 }
  0x5b   : > { %p1188_p5 = pneg %p1612_p13  ;;  %p1192_p4 = scmp.lt.u32.totalorder %s1619_s15, %s1899_s1 }
  0x5c   : > { %p1193_p7 = scmp.lt.u32.totalorder %s1191_s10, %s1186_s0  ;;  %p1195_p12 = scmp.lt.u32.totalorder %s1186_s0, %s1619_s15 }
  0x5d   : > { %p1189_p3 = pnand %p1188_p5, %p1187_p0 }
  0x5e   : > { %p1194_p8 = por %p1193_p7, %p1192_p4 }
  0x5f   : > { %p1190_p1 = pneg %p1189_p3 }
  0x60   : > { %p1196_p9 = por %p1195_p12, %p1194_p8 }
  0x62   : > { %p1197_p10 = pnand %p1196_p9, %p1190_p1 }
  0x64   : > { %1200 = shalt.err (!%p1197_p10)
}
  0x65   : > { %s1201_s12 = scalar_lea.vmem %s1606_s26, 128  ;;  %s1359_s7 = smov [#allocation5]  }
  0x66   : > { %p1202_p0 = scmp.ne.s32.totalorder %s1606_s26, %s1201_s12  ;;  %s1206_s8 = sshll.u32 %s1359_s7, 4  ;;  %s1207_s8 = int_to_ptr.vmem [resolvable:$false] %s1206_s8 }
  0x67   : > { %s1208_s23 = scalar_lea.vmem %s1207_s8, 256  ;;  %p1209_p11 = scmp.lt.s32.totalorder %s1606_s26, %s1207_s8 }
  0x68   : > { %p1204_p3 = pnand %p1202_p0, %p1188_p5  ;;  %p1210_p4 = scmp.lt.s32.totalorder %s1208_s23, %s1201_s12 }
  0x6a   : > { %p1205_p2 = pneg %p1204_p3  ;;  %p1211_p7 = por %p1210_p4, %p1209_p11 }
  0x6c   : > { %p1212_p8 = pnand %p1211_p7, %p1205_p2 }
  0x6e   : > { %1215 = shalt.err (!%p1212_p8)
}
  0x6f   : > { %s1360_s9 = smov 64   ;;  %s1361_s0 = smov 4  }
  0x70   : > { %1008 = dma.hbm_to_vmem [thread:$0]  (!%p1612_p13), %s1619_s15, 128, %s1606_s26, %s1621_s22, %s1360_s9, %s1360_s9, %s1361_s0  }
  0x71   : > { %214 = sbr.rel (%p1537_p6) target bundleno = 391 (0x187), region = 32  ;;  %s216_s30 = sand.u32 (!%p1537_p6), 1, %s1322_s19  }
  0x72   : > { %s874_s21 = sshll.u32 (!%p1537_p6), %s216_s30, 8  ;;  %s217_s10 = scalar_lea.sflag (!%p1537_p6), [#allocation3], %s216_s30 }
  0x73   : > { %s1652_s5 = scalar_lea.vmem (!%p1537_p6), [#allocation2], %s874_s21  ;;  %p1943_p11 = scmp.ne.s32.totalorder (!%p1537_p6), %s1924_s6, 0 }
  0x78   : > { %1281 = dma.done.wait (%p1943_p11), %s217_s10, 4096  }
  0x79   : > { %1283 = vsyncadd (%p1943_p11), %s217_s10, 4294963200  ;;  %s225_s29 = sand.u32 1, %s1310_s16   ;;  %p1944_p2 = scmp.ne.s32.totalorder %s1931_s18, 0 }
  0x7a   : > { %s875_s3 = sshll.u32 %s225_s29, 3  ;;  %s226_s26 = scalar_lea.sflag [#allocation6], %s225_s29 }
  0x7b   : > { %s229_s15 = scalar_lea.vmem [#allocation5], %s875_s3 }
  0x7c   : > { %1285 = dma.done.wait (%p1944_p2), %s226_s26, 128  }
  0x7d   : > { %1287 = vsyncadd (%p1944_p2), %s226_s26, 4294967168  ;;  %v1155_v0 = vld [vmem:[%s229_s15] sm:$0xff]   ;;  %vm419_vm0 = vcmask 130048   ;;  %v262_v6 = vld [vmem:[%s1652_s5 + $0x10] sm:$0xff]  ;;  %s254_s6 = sand.u32 1, %s1298_s13   ;;  %s1945_s22 = sld [smem:[#allocation24_spill]] }
  0x7e   : > { %v260_v1 = vld [vmem:[%s1652_s5] sm:$0xff]  ;;  %v261_v2 = vld [vmem:[%s1652_s5 + $0x8] sm:$0xff]  ;;  %954 = vmatprep.subr.bf16.mxu0 %v1155_v0  ;;  %988 = vmatprep.subr.bf16.mxu1 %v1155_v0  ;;  %v263_v7 = vld [vmem:[%s1652_s5 + $0x18] sm:$0xff]  ;;  %s876_s12 = sshll.u32 %s254_s6, 7  ;;  %vm661_vm1 = vcmask 125952   ;;  %s695_s8 = scalar_lea.sflag [#allocation4], %s254_s6 }
  0x7f   : > { %v276_v3 = vld [vmem:[%s1652_s5 + $0x80] sm:$0xff]  ;;  %v920_v4 = vpack.c.bf16 %v261_v2, %v260_v1  ;;  %v277_v5 = vld [vmem:[%s1652_s5 + $0x88] sm:$0xff]  ;;  %955 = vmatpush3.bf16.msra.mxu0 %v1155_v0  ;;  %989 = vmatpush3.bf16.msra.mxu1 %v1155_v0  ;;  %v921_v9 = vpack.c.bf16 %v263_v7, %v262_v6  ;;  %v278_v10 = vld [vmem:[%s1652_s5 + $0x90] sm:$0xff]  ;;  %s1727_s7 = scalar_lea.vmem [#allocation7], %s876_s12 }
  0x80   : > { %v928_v8 = vpack.c.bf16 %v277_v5, %v276_v3  ;;  %v279_v11 = vld [vmem:[%s1652_s5 + $0x98] sm:$0xff]  ;;  %v264_v12 = vld [vmem:[%s1652_s5 + $0x20] sm:$0xff]  ;;  %v265_v14 = vld [vmem:[%s1652_s5 + $0x28] sm:$0xff] }
  0x81   : > { %956 = vmatprep.mubr.msk.bf16.mxu0 %vm419_vm0, %v920_v4  ;;  %v929_v13 = vpack.c.bf16 %v279_v11, %v278_v10  ;;  %v280_v15 = vld [vmem:[%s1652_s5 + $0xa0] sm:$0xff]  ;;  %v281_v16 = vld [vmem:[%s1652_s5 + $0xa8] sm:$0xff]  ;;  %v922_v17 = vpack.c.bf16 %v265_v14, %v264_v12  ;;  %v266_v19 = vld [vmem:[%s1652_s5 + $0x30] sm:$0xff] }
  0x82   : > { %972 = vmatprep.mubr.msk.bf16.mxu1 %vm419_vm0, %v928_v8  ;;  %v930_v18 = vpack.c.bf16 %v281_v16, %v280_v15  ;;  %957 = vmatmul.mubr.msk.bf16.vlgmr.msra.gmra.mrb[0].mxu0 %vm419_vm0, %v921_v9  ;;  %v267_v20 = vld [vmem:[%s1652_s5 + $0x38] sm:$0xff]  ;;  %v282_v21 = vld [vmem:[%s1652_s5 + $0xb0] sm:$0xff]  ;;  %v268_v23 = vld [vmem:[%s1652_s5 + $0x40] sm:$0xff] }
  0x83   : > { %973 = vmatmul.mubr.msk.bf16.vlgmr.msra.gmra.mrb[0].mxu1 %vm419_vm0, %v929_v13  ;;  %960 = vmatprep.mubr.msk.bf16.mxu0 %vm419_vm0, %v922_v17  ;;  %v283_v22 = vld [vmem:[%s1652_s5 + $0xb8] sm:$0xff]  ;;  %v269_v24 = vld [vmem:[%s1652_s5 + $0x48] sm:$0xff]  ;;  %v284_v25 = vld [vmem:[%s1652_s5 + $0xc0] sm:$0xff]  ;;  %v923_v27 = vpack.c.bf16 %v267_v20, %v266_v19 }
  0x84   : > { %976 = vmatprep.mubr.msk.bf16.mxu1 %vm419_vm0, %v930_v18  ;;  %v285_v26 = vld [vmem:[%s1652_s5 + $0xc8] sm:$0xff]  ;;  %v931_v28 = vpack.c.bf16 %v283_v22, %v282_v21  ;;  %v924_v29 = vpack.c.bf16 %v269_v24, %v268_v23  ;;  %v270_v31 = vld [vmem:[%s1652_s5 + $0x50] sm:$0xff]  ;;  %v271_v32 = vld [vmem:[%s1652_s5 + $0x58] sm:$0xff] }
  0x85   : > { %v932_v30 = vpack.c.bf16 %v285_v26, %v284_v25  ;;  %v286_v33 = vld [vmem:[%s1652_s5 + $0xd0] sm:$0xff]  ;;  %v287_v34 = vld [vmem:[%s1652_s5 + $0xd8] sm:$0xff]  ;;  %v272_v35 = vld [vmem:[%s1652_s5 + $0x60] sm:$0xff]  ;;  %v925_v39 = vpack.c.bf16 %v271_v32, %v270_v31 }
  0x86   : > { %v273_v36 = vld [vmem:[%s1652_s5 + $0x68] sm:$0xff]  ;;  %v288_v37 = vld [vmem:[%s1652_s5 + $0xe0] sm:$0xff]  ;;  %v933_v40 = vpack.c.bf16 %v287_v34, %v286_v33  ;;  %v274_v43 = vld [vmem:[%s1652_s5 + $0x70] sm:$0xff] }
  0x87   : > { %v289_v38 = vld [vmem:[%s1652_s5 + $0xe8] sm:$0xff]  ;;  %v926_v41 = vpack.c.bf16 %v273_v36, %v272_v35  ;;  %v275_v44 = vld [vmem:[%s1652_s5 + $0x78] sm:$0xff]  ;;  %v290_v45 = vld [vmem:[%s1652_s5 + $0xf0] sm:$0xff] }
  0x88   : > { %v934_v42 = vpack.c.bf16 %v289_v38, %v288_v37  ;;  %v291_v46 = vld [vmem:[%s1652_s5 + $0xf8] sm:$0xff]  ;;  %v927_v47 = vpack.c.bf16 %v275_v44, %v274_v43  ;;  %v1715_v49 = vld [vmem:[%s1945_s22] ss:$0 sm:$0xff] }
  0x89   : > { %v935_v48 = vpack.c.bf16 %v291_v46, %v290_v45 }
  0x8a   : > { %961 = vmatmul.mubr.msk.bf16.gmra.mrb[4].mxu0 %vm419_vm0, %v923_v27 }
  0x8b   : > { %977 = vmatmul.mubr.msk.bf16.gmra.mrb[4].mxu1 %vm419_vm0, %v931_v28  ;;  %964 = vmatprep.mubr.msk.bf16.mxu0 %vm419_vm0, %v924_v29 }
  0x8c   : > { %980 = vmatprep.mubr.msk.bf16.mxu1 %vm419_vm0, %v932_v30 }
  0x92   : > { %965 = vmatmul.mubr.msk.bf16.gmra.mrb[8].mxu0 %vm419_vm0, %v925_v39 }
  0x93   : > { %981 = vmatmul.mubr.msk.bf16.gmra.mrb[8].mxu1 %vm419_vm0, %v933_v40  ;;  %968 = vmatprep.mubr.msk.bf16.mxu0 %vm419_vm0, %v926_v41 }
  0x94   : > { %984 = vmatprep.mubr.msk.bf16.mxu1 %vm419_vm0, %v934_v42 }
  0x9a   : > { %969 = vmatmul.mubr.msk.bf16.gmra.mrb[12].mxu0 %vm419_vm0, %v927_v47 }
  0x9b   : > { %985 = vmatmul.mubr.msk.bf16.gmra.mrb[12].mxu1 %vm419_vm0, %v935_v48 }
 0x155   : > { %v958_v50 = vpop.f32.mrb[0].mxu0 }
 0x156   : > { %v974_v51 = vpop.f32.mrb[0].mxu1  ;;  %v511_v52 = vadd.f32 %v958_v50, %v1715_v49  ;;  %v502_v54 = vpop.f32.mrb[1].mxu0 }
 0x157   : > { %v575_v53 = vadd.f32 %v974_v51, %v1715_v49  ;;  %v566_v55 = vpop.f32.mrb[1].mxu1  ;;  %v503_v56 = vadd.f32 %v1715_v49, %v502_v54  ;;  %v959_v58 = vpop.f32.mrb[2].mxu0 }
 0x158   : > { %v567_v57 = vadd.f32 %v1715_v49, %v566_v55  ;;  %v975_v59 = vpop.f32.mrb[2].mxu1  ;;  %v631_v60 = vpack.c.bf16 %v511_v52, %v511_v52  ;;  %v514_v62 = vadd.f32 %v959_v58, %v1715_v49  ;;  %v505_v0 = vpop.f32.mrb[3].mxu0 }
 0x159   : > { %v647_v61 = vpack.c.bf16 %v575_v53, %v575_v53  ;;  %v578_v63 = vadd.f32 %v975_v59, %v1715_v49  ;;  %v569_v1 = vpop.f32.mrb[3].mxu1  ;;  %v629_v2 = vpack.c.bf16 %v503_v56, %v503_v56  ;;  %v506_v4 = vadd.f32 %v1715_v49, %v505_v0 }
 0x15a   : > { %v645_v3 = vpack.c.bf16 %v567_v57, %v567_v57  ;;  %v570_v5 = vadd.f32 %v1715_v49, %v569_v1  ;;  %664 = vst.msk [vmem:[%s1727_s7 + $0x8] sm:$0xf] %vm661_vm1, %v631_v60  ;;  %v632_v6 = vpack.c.bf16 %v514_v62, %v514_v62 }
 0x15b   : > { %680 = vst.msk [vmem:[%s1727_s7 + $0x48] sm:$0xf] %vm661_vm1, %v647_v61  ;;  %v648_v7 = vpack.c.bf16 %v578_v63, %v578_v63  ;;  %662 = vst.msk [vmem:[%s1727_s7] sm:$0xf] %vm661_vm1, %v629_v2  ;;  %v630_v8 = vpack.c.bf16 %v506_v4, %v506_v4 }
 0x15c   : > { %678 = vst.msk [vmem:[%s1727_s7 + $0x40] sm:$0xf] %vm661_vm1, %v645_v3  ;;  %v646_v9 = vpack.c.bf16 %v570_v5, %v570_v5  ;;  %665 = vst.msk [vmem:[%s1727_s7 + $0xc] sm:$0xf] %vm661_vm1, %v632_v6 }
 0x15d   : > { %681 = vst.msk [vmem:[%s1727_s7 + $0x4c] sm:$0xf] %vm661_vm1, %v648_v7  ;;  %663 = vst.msk [vmem:[%s1727_s7 + $0x4] sm:$0xf] %vm661_vm1, %v630_v8  ;;  %v962_v10 = vpop.f32.mrb[4].mxu0 }
 0x15e   : > { %679 = vst.msk [vmem:[%s1727_s7 + $0x44] sm:$0xf] %vm661_vm1, %v646_v9  ;;  %v978_v11 = vpop.f32.mrb[4].mxu1  ;;  %v527_v12 = vadd.f32 %v962_v10, %v1715_v49  ;;  %v518_v14 = vpop.f32.mrb[5].mxu0 }
 0x15f   : > { %v591_v13 = vadd.f32 %v978_v11, %v1715_v49  ;;  %v582_v15 = vpop.f32.mrb[5].mxu1  ;;  %v519_v16 = vadd.f32 %v1715_v49, %v518_v14  ;;  %v963_v18 = vpop.f32.mrb[6].mxu0 }
 0x160   : > { %v583_v17 = vadd.f32 %v1715_v49, %v582_v15  ;;  %v979_v19 = vpop.f32.mrb[6].mxu1  ;;  %v635_v20 = vpack.c.bf16 %v527_v12, %v527_v12  ;;  %v530_v22 = vadd.f32 %v963_v18, %v1715_v49  ;;  %v521_v24 = vpop.f32.mrb[7].mxu0 }
 0x161   : > { %v651_v21 = vpack.c.bf16 %v591_v13, %v591_v13  ;;  %v594_v23 = vadd.f32 %v979_v19, %v1715_v49  ;;  %v585_v25 = vpop.f32.mrb[7].mxu1  ;;  %v633_v26 = vpack.c.bf16 %v519_v16, %v519_v16  ;;  %v522_v28 = vadd.f32 %v1715_v49, %v521_v24 }
 0x162   : > { %v649_v27 = vpack.c.bf16 %v583_v17, %v583_v17  ;;  %v586_v29 = vadd.f32 %v1715_v49, %v585_v25  ;;  %668 = vst.msk [vmem:[%s1727_s7 + $0x18] sm:$0xf] %vm661_vm1, %v635_v20  ;;  %v636_v30 = vpack.c.bf16 %v530_v22, %v530_v22 }
 0x163   : > { %684 = vst.msk [vmem:[%s1727_s7 + $0x58] sm:$0xf] %vm661_vm1, %v651_v21  ;;  %v652_v31 = vpack.c.bf16 %v594_v23, %v594_v23  ;;  %666 = vst.msk [vmem:[%s1727_s7 + $0x10] sm:$0xf] %vm661_vm1, %v633_v26  ;;  %v634_v32 = vpack.c.bf16 %v522_v28, %v522_v28 }
 0x164   : > { %682 = vst.msk [vmem:[%s1727_s7 + $0x50] sm:$0xf] %vm661_vm1, %v649_v27  ;;  %v650_v33 = vpack.c.bf16 %v586_v29, %v586_v29  ;;  %669 = vst.msk [vmem:[%s1727_s7 + $0x1c] sm:$0xf] %vm661_vm1, %v636_v30 }
 0x165   : > { %685 = vst.msk [vmem:[%s1727_s7 + $0x5c] sm:$0xf] %vm661_vm1, %v652_v31  ;;  %667 = vst.msk [vmem:[%s1727_s7 + $0x14] sm:$0xf] %vm661_vm1, %v634_v32  ;;  %v966_v34 = vpop.f32.mrb[8].mxu0 }
 0x166   : > { %683 = vst.msk [vmem:[%s1727_s7 + $0x54] sm:$0xf] %vm661_vm1, %v650_v33  ;;  %v982_v35 = vpop.f32.mrb[8].mxu1  ;;  %v543_v36 = vadd.f32 %v966_v34, %v1715_v49  ;;  %v534_v38 = vpop.f32.mrb[9].mxu0 }
 0x167   : > { %v607_v37 = vadd.f32 %v982_v35, %v1715_v49  ;;  %v598_v39 = vpop.f32.mrb[9].mxu1  ;;  %v535_v40 = vadd.f32 %v1715_v49, %v534_v38  ;;  %v967_v42 = vpop.f32.mrb[10].mxu0 }
 0x168   : > { %v599_v41 = vadd.f32 %v1715_v49, %v598_v39  ;;  %v983_v43 = vpop.f32.mrb[10].mxu1  ;;  %v639_v44 = vpack.c.bf16 %v543_v36, %v543_v36  ;;  %v546_v46 = vadd.f32 %v967_v42, %v1715_v49  ;;  %v537_v48 = vpop.f32.mrb[11].mxu0 }
 0x169   : > { %v655_v45 = vpack.c.bf16 %v607_v37, %v607_v37  ;;  %v610_v47 = vadd.f32 %v983_v43, %v1715_v49  ;;  %v601_v50 = vpop.f32.mrb[11].mxu1  ;;  %v637_v51 = vpack.c.bf16 %v535_v40, %v535_v40  ;;  %v538_v53 = vadd.f32 %v1715_v49, %v537_v48 }
 0x16a   : > { %v653_v52 = vpack.c.bf16 %v599_v41, %v599_v41  ;;  %v602_v54 = vadd.f32 %v1715_v49, %v601_v50  ;;  %672 = vst.msk [vmem:[%s1727_s7 + $0x28] sm:$0xf] %vm661_vm1, %v639_v44  ;;  %v640_v55 = vpack.c.bf16 %v546_v46, %v546_v46 }
 0x16b   : > { %688 = vst.msk [vmem:[%s1727_s7 + $0x68] sm:$0xf] %vm661_vm1, %v655_v45  ;;  %v656_v56 = vpack.c.bf16 %v610_v47, %v610_v47  ;;  %670 = vst.msk [vmem:[%s1727_s7 + $0x20] sm:$0xf] %vm661_vm1, %v637_v51  ;;  %v638_v57 = vpack.c.bf16 %v538_v53, %v538_v53 }
 0x16c   : > { %686 = vst.msk [vmem:[%s1727_s7 + $0x60] sm:$0xf] %vm661_vm1, %v653_v52  ;;  %v654_v58 = vpack.c.bf16 %v602_v54, %v602_v54  ;;  %673 = vst.msk [vmem:[%s1727_s7 + $0x2c] sm:$0xf] %vm661_vm1, %v640_v55 }
 0x16d   : > { %689 = vst.msk [vmem:[%s1727_s7 + $0x6c] sm:$0xf] %vm661_vm1, %v656_v56  ;;  %671 = vst.msk [vmem:[%s1727_s7 + $0x24] sm:$0xf] %vm661_vm1, %v638_v57  ;;  %v970_v59 = vpop.f32.mrb[12].mxu0 }
 0x16e   : > { %687 = vst.msk [vmem:[%s1727_s7 + $0x64] sm:$0xf] %vm661_vm1, %v654_v58  ;;  %v986_v60 = vpop.f32.mrb[12].mxu1  ;;  %v559_v61 = vadd.f32 %v970_v59, %v1715_v49  ;;  %v550_v63 = vpop.f32.mrb[13].mxu0 }
 0x16f   : > { %v623_v62 = vadd.f32 %v986_v60, %v1715_v49  ;;  %v614_v0 = vpop.f32.mrb[13].mxu1  ;;  %v551_v1 = vadd.f32 %v1715_v49, %v550_v63  ;;  %v971_v3 = vpop.f32.mrb[14].mxu0 }
 0x170   : > { %v615_v2 = vadd.f32 %v1715_v49, %v614_v0  ;;  %v987_v4 = vpop.f32.mrb[14].mxu1  ;;  %v643_v5 = vpack.c.bf16 %v559_v61, %v559_v61  ;;  %v562_v7 = vadd.f32 %v971_v3, %v1715_v49  ;;  %v553_v9 = vpop.f32.mrb[15].mxu0 }
 0x171   : > { %v659_v6 = vpack.c.bf16 %v623_v62, %v623_v62  ;;  %v626_v8 = vadd.f32 %v987_v4, %v1715_v49  ;;  %v617_v10 = vpop.f32.mrb[15].mxu1  ;;  %v641_v11 = vpack.c.bf16 %v551_v1, %v551_v1  ;;  %v554_v13 = vadd.f32 %v1715_v49, %v553_v9 }
 0x172   : > { %v657_v12 = vpack.c.bf16 %v615_v2, %v615_v2  ;;  %v618_v14 = vadd.f32 %v1715_v49, %v617_v10  ;;  %676 = vst.msk [vmem:[%s1727_s7 + $0x38] sm:$0xf] %vm661_vm1, %v643_v5  ;;  %v644_v15 = vpack.c.bf16 %v562_v7, %v562_v7 }
 0x173   : > { %692 = vst.msk [vmem:[%s1727_s7 + $0x78] sm:$0xf] %vm661_vm1, %v659_v6  ;;  %v660_v16 = vpack.c.bf16 %v626_v8, %v626_v8  ;;  %674 = vst.msk [vmem:[%s1727_s7 + $0x30] sm:$0xf] %vm661_vm1, %v641_v11  ;;  %v642_v17 = vpack.c.bf16 %v554_v13, %v554_v13 }
 0x174   : > { %690 = vst.msk [vmem:[%s1727_s7 + $0x70] sm:$0xf] %vm661_vm1, %v657_v12  ;;  %v658_v18 = vpack.c.bf16 %v618_v14, %v618_v14  ;;  %677 = vst.msk [vmem:[%s1727_s7 + $0x3c] sm:$0xf] %vm661_vm1, %v644_v15 }
 0x175   : > { %693 = vst.msk [vmem:[%s1727_s7 + $0x7c] sm:$0xf] %vm661_vm1, %v660_v16  ;;  %675 = vst.msk [vmem:[%s1727_s7 + $0x34] sm:$0xf] %vm661_vm1, %v642_v17 }
 0x176   : > { %691 = vst.msk [vmem:[%s1727_s7 + $0x74] sm:$0xf] %vm661_vm1, %v658_v18 }
 0x177   : > { %s1946_s23 = sld [smem:[#allocation15_spill]]  ;;  %s1947_s9 = sld [smem:[#allocation16_spill]] }
 0x178   : > { %s1948_s0 = sld [smem:[#allocation14_spill]]  ;;  %s1949_s30 = sld [smem:[#allocation20_spill]] }
 0x179   : > { %s728_s29 = sshll.u32 %s1727_s7, 4  ;;  %s1950_s6 = sld [smem:[#allocation25_spill]]  ;;  %s729_s29 = int_to_ptr.vmem [resolvable:$true] %s728_s29 }
 0x17a   : > { %s1362_s22 = smov 512   ;;  %s1363_s12 = smov 2048  }
 0x17b   : > { %s1366_s7 = smov 128  }
 0x17d   : > { %s913_s21 = sshll.u32 %s1946_s23, 4  ;;  %s936_s10 = sshll.u32 %s1947_s9, 7 }
 0x17e   : > { %s707_s5 = sadd.s32 %s1948_s0, %s913_s21  ;;  %p1951_p6 = scmp.ne.s32.totalorder %s1949_s30, 0 }
 0x17f   : > { %s709_s3 = sadd.s32 %s936_s10, %s707_s5  ;;  %s1364_s23 = smov 8  }
 0x180   : > { %s915_s26 = sshll.u32 %s709_s3, 6  ;;  %994 = sst [smem:[#allocation9]] (%p1951_p6), %s1362_s22 }
 0x181   : > { %s711_s18 = scalar_lea.hbm %s1950_s6, %s915_s26  ;;  %995 = sst [smem:[#allocation9 + $0x1]] (%p1951_p6), %s1363_s12 }
 0x182   : > { %996 = sst [smem:[#allocation9 + $0x2]] (%p1951_p6), %s1364_s23  ;;  %s1365_s9 = smov 64  }
 0x183   : > { %997 = sst [smem:[#allocation9 + $0x3]] (%p1951_p6), %s1365_s9  ;;  %s1367_s0 = smov 4  }
 0x184   : > { %998 = sst [smem:[#allocation9 + $0x4]] (%p1951_p6), %s1366_s7  ;;  %s1368_s21 = smov [#allocation8]  }
 0x185   : > { %999 = sst [smem:[#allocation9 + $0x5]] (%p1951_p6), %s1367_s0  ;;  %s1369_s10 = smov 0  }
 0x186   : > { %1000 = dma.general (%p1951_p6), %s729_s29, 2048, %s711_s18, %s695_s8, %s1368_s21, [#allocation9], %s1369_s10, 0  }
 0x187 PF: > { %s1952_s5 = sld [smem:[#allocation13_spill]]  ;;  %p1014_p10 = scmp.ge.s32.totalorder %s1354_s27, 2 }
 0x188   : > { %p1953_p13 = scmp.ne.s32.totalorder %s1939_s11, 0 }
 0x18a   : > { %p1010_p5 = pnand %p1014_p10, %p1953_p13 }
 0x18d   : > { %s756_s3 = sand.u32 1, %s1952_s5  }
 0x18e   : > { %s757_s26 = scalar_lea.sflag [#allocation4], %s756_s3 }
 0x18f   : > { %1289 = dma.done.wait (!%p1010_p5), %s757_s26, 2048  }
 0x190   : > { %1291 = vsyncadd (!%p1010_p5), %s757_s26, 4294965248  ;;  %s22_s27 = sadd.s32 1, %s1354_s27   ;;  %s1955_s8 = sld [smem:[#allocation22_spill]] }
 0x191   : > { %p1845_p1 = scmp.ge.s32.totalorder %s22_s27, 18   ;;  %s1956_s23 = sld [smem:[#allocation17_spill]] }
 0x192   : > { %s1957_s11 = sld [smem:[#allocation18_spill]]  ;;  %s1958_s30 = sld [smem:[#allocation19_spill]] }
 0x193   : > { %s1959_s26 = sld [smem:[#allocation21_spill]]  ;;  %s1960_s12 = smov %s1298_s13 }
 0x194   : > { %s1962_s13 = smov %s1302_s14  ;;  %s1963_s14 = smov %s1602_s2 }
 0x195   : > { %s1964_s15 = smov %s1310_s16  ;;  %s1965_s16 = smov %s1314_s17 }
 0x196   : > { %s1966_s17 = smov %s1955_s8  ;;  %s1967_s18 = smov %s1322_s19 }
 0x197   : > { %s1968_s19 = smov %s1326_s20  ;;  %s1969_s20 = smov %s1598_s4 }
 0x198   : > { %s1970_s21 = smov %s1342_s24  ;;  %s1971_s22 = smov %s1346_s25 }
 0x199   : > { %s1972_s24 = smov %s1957_s11  ;;  %s1973_s25 = smov %s1958_s30 }
 0x19a   :  { %21 = sbr.rel (!%p1845_p1) target bundleno = 17 (0x11), region = 95 }
 0x1a1   :  { %762 = vsyncpa [#allocation3], 1 }
 0x1a2   :  { %764 = vsyncpa [#allocation3 + $0x1], 1 }
 0x1a3   :  { %765 = vsyncpa [#allocation6], 1 }
 0x1a4   :  { %767 = vsyncpa [#allocation6 + $0x1], 1 }
 0x1a5   :  { %768 = vsyncpa [#allocation4], 1 }
 0x1a6   :  { %770 = vsyncpa [#allocation4 + $0x1], 1 }

</bundles_post_ra>
